<compile_context>
chip_gen: v6e
topology: v6e:2x2x1
jax: 0.10.0
libtpu: 0.0.40
codegen_flags: <defaults>
</compile_context>

<pallas_src>
import jax
import jax.numpy as jnp
from jax.experimental import pallas as pl
from jax.experimental.pallas import tpu as pltpu


def _dma_identity_kernel(x_hbm, o_hbm, sem):
    # Single HBM -> HBM DMA of the whole tensor; no VMEM staging, no grid.
    cp = pltpu.make_async_copy(x_hbm, o_hbm, sem)
    cp.start()
    cp.wait()


def _pallas_identity_dma(x):
    """Copy x into a fresh HBM buffer with one DMA inside a Pallas kernel."""
    return pl.pallas_call(
        _dma_identity_kernel,
        out_shape=jax.ShapeDtypeStruct(x.shape, x.dtype),
        in_specs=[pl.BlockSpec(memory_space=pl.ANY)],
        out_specs=pl.BlockSpec(memory_space=pl.ANY),
        scratch_shapes=[pltpu.SemaphoreType.DMA(())],
    )(x)


# Below this many bytes, pallas_call launch/prologue overhead dominates the
# sub-microsecond DMA, so the host-level identity is strictly faster.
_SMALL_BYPASS_BYTES = 1 << 20  # 1 MiB


def print_layer(
    x,
    print_str="shape",
    materialize_copy=False,
    small_bypass_bytes=_SMALL_BYPASS_BYTES,
    print_every_call=False,
):
    """JAX/Pallas equivalent of PrintLayer.forward.

    Prints `{print_str}: {x.shape}` and returns x unchanged.

    * Default (materialize_copy=False): zero device work — the optimal
      identity on every TPU generation.
    * materialize_copy=True: returns a fresh buffer produced by a single
      HBM->HBM DMA inside a Pallas kernel (bypassed for tensors smaller than
      `small_bypass_bytes`, where launch overhead would dominate).
    * print_every_call=True: uses jax.debug.print so the message fires on
      every forward call even under jax.jit (host callback; adds overhead).
      The default host print fires at trace time, matching PyTorch tracing.
    """
    if print_every_call:
        jax.debug.print(print_str + ": {s}", s=tuple(x.shape))
    else:
        print(f"{print_str}: {tuple(x.shape)}")

    if not materialize_copy:
        # Fastest possible identity: no device work at all.
        return x

    nbytes = x.size * jnp.dtype(x.dtype).itemsize
    if x.size == 0 or nbytes < small_bypass_bytes:
        # Too small for a kernel launch to be worthwhile.
        return x

    return _pallas_identity_dma(x)


if __name__ == "__main__":
    key = jax.random.PRNGKey(0)
    x = jax.random.normal(key, (2, 4, 16, 16), dtype=jnp.float32)

    # Default path: zero-copy identity (optimal).
    y_default = print_layer(x, print_str="shape")
    assert y_default is x

    # Explicitly exercise the Pallas HBM->HBM DMA path on the small test
    # tensor (disable the small-tensor bypass so the kernel actually runs).
    y = print_layer(x, print_str="shape", materialize_copy=True, small_bypass_bytes=0)
    y = jax.block_until_ready(y)

    assert y.shape == x.shape
    assert y.dtype == x.dtype
    assert bool(jnp.all(y == x))
    print("KERNEL_OK")
</pallas_src>

<mosaic_0001>
module attributes {stable_mosaic.version = 11 : i64} {
  func.func @_dma_identity_kernel(%arg0: memref<2x4x16x16xf32, #tpu.memory_space<any>>, %arg1: memref<2x4x16x16xf32, #tpu.memory_space<any>>, %arg2: memref<!tpu.dma_semaphore, #tpu.memory_space<semaphore_mem>>) attributes {dimension_semantics = [], scalar_prefetch = 0 : i64, scratch_operands = 1 : i64, tpu.core_type = #tpu.core_type<tc>} {
    tpu.enqueue_dma source(%arg0 : memref<2x4x16x16xf32, #tpu.memory_space<any>>) target(%arg1 : memref<2x4x16x16xf32, #tpu.memory_space<any>>) target_semaphore(%arg2 : memref<!tpu.dma_semaphore, #tpu.memory_space<semaphore_mem>>)
    tpu.wait_dma2 semaphore(%arg2 : memref<!tpu.dma_semaphore, #tpu.memory_space<semaphore_mem>>) src(%arg0 : memref<2x4x16x16xf32, #tpu.memory_space<any>>) dst(%arg1 : memref<2x4x16x16xf32, #tpu.memory_space<any>>)
    return
  }
}

</mosaic_0001>

<bundles_post_ra>
// kernel: tpu_custom_call.1
= control target key start
LH: loop header
LB: loop body
LE: loop exit
PB: predicated region body
PF: predicated region fallthrough
CT: control target
= control target key end

     0   :  { %s30_s6 = smov [#allocation2]   ;;  %s31_s7 = smov 131072   ;;  %s49_s0 = inlined_call_operand.hbm [shape: f32[2,4,16,16], index: 0, kind: input, shape index: {}]   ;;  %s50_s1 = inlined_call_operand.hbm [shape: f32[2,4,16,16], index: 1, kind: output, shape index: {}]  }
   0x1   :  { %s32_s8 = smov 0  }
   0x2   :  { %12 = dma.general %s49_s0, 2048, %s50_s1, %s30_s6, %s31_s7, [#allocation4], %s32_s8, 0  }
   0x3   :  { %28 = dma.done.wait [#allocation2], 2048 }
   0x4   :  { %29 = vsyncadd [#allocation2], 4294965248 }
   0x5   :  { %18 = vsyncmov [#allocation2] }
   0x8   :  { %s19_s13 = vpop.sfrf %18 }
   0x9   :  { %p24_p0 = scmp.ne.s32.totalorder %s19_s13, 0 }
   0xb   :  { %23 = shalt.err (%p24_p0)  }

</bundles_post_ra>
